<compile_context>
chip_gen: v5e
topology: v5e:2x2
jax: 0.10.0
libtpu: 0.0.40
codegen_flags: <defaults>
</compile_context>

<pallas_src>
import numpy as np
import jax
import jax.numpy as jnp
from jax import lax
from jax.experimental import pallas as pl
from jax.experimental.pallas import tpu as pltpu

# ---------------- configuration ----------------
GRID_RES = 8            # grid_resolution
NB_ADD = 2              # nb_additional_data
NUM_AGENTS = 2
NUM_LANDMARKS = 2
FLAT_SIZE = max(NUM_AGENTS * 2, NUM_LANDMARKS * 2)      # 4  (CNNLayer output_size)
INPUT_SIZE = FLAT_SIZE * 2 + NB_ADD * 2                  # 12
DIM_ACTOR = GRID_RES * 2 + NB_ADD                        # 18
HIDDEN = 32
KSIZE = 2
STRIDE = 1
OUT_SP = (GRID_RES - KSIZE) // STRIDE + 1                # 7
CONV_FLAT = OUT_SP * OUT_SP                              # 49
GRID_FLAT = GRID_RES * GRID_RES                          # 64
SLAB_ROWS = 2 * GRID_FLAT + 2 * NB_ADD                   # 132 = [g1(64); g2(64); ad(4)]
LN_EPS = 1e-5

# packed "misc" operand layout (all column vectors stacked along rows)
_OFF_BC = 0
_OFF_BL = _OFF_BC + 2 * CONV_FLAT      # 98
_OFF_B1 = _OFF_BL + 2 * FLAT_SIZE      # 106
_OFF_LN1G = _OFF_B1 + HIDDEN           # 138
_OFF_LN1B = _OFF_LN1G + HIDDEN         # 170
_OFF_B2 = _OFF_LN1B + HIDDEN           # 202
_OFF_LN2G = _OFF_B2 + HIDDEN           # 234
_OFF_LN2B = _OFF_LN2G + HIDDEN         # 266
MISC_ROWS = _OFF_LN2B + HIDDEN         # 298


# ---------------- hardware query (module-level, outside jit) ----------------
def _vmem_capacity_bytes():
    try:
        info = pltpu.get_tpu_info()
        for name in ("vmem_capacity_bytes", "vmem_bytes", "vmem_size_bytes"):
            v = getattr(info, name, None)
            if v:
                return int(v)
    except Exception:
        pass
    return 64 << 20          # conservative fallback (v7x-sized budget)


_VMEM_CAP = _vmem_capacity_bytes()
if _VMEM_CAP >= (100 << 20):           # v5e / v6e: 128 MiB VMEM per TC
    _DEFAULT_B_TILE = 32768
    _VMEM_LIMIT = 96 << 20
else:                                  # v7x: 64 MiB VMEM per TC
    _DEFAULT_B_TILE = 16384
    _VMEM_LIMIT = 52 << 20


# ---------------- constant im2col scatter patterns (host-built once at import) ----------------
def _build_conv_patterns():
    pats = np.zeros((KSIZE, KSIZE, GRID_FLAT, CONV_FLAT), np.float32)
    for dh in range(KSIZE):
        for dw in range(KSIZE):
            for oh in range(OUT_SP):
                for ow in range(OUT_SP):
                    ih, iw = oh * STRIDE + dh, ow * STRIDE + dw
                    pats[dh, dw, ih * GRID_RES + iw, oh * OUT_SP + ow] = 1.0
    return jnp.asarray(pats)                             # (2, 2, 64, 49)


_CONV_PATTERNS = _build_conv_patterns()


def conv_as_matrix(k):
    """(2,2) conv kernel -> (64,49) im2col matrix.  Pure JAX; safe under jax.jit."""
    return jnp.einsum("ij,ijab->ab", k, _CONV_PATTERNS)


# ---------------- Pallas kernel ----------------
def merged_kernel(x_ref, wc_ref, wl_ref, w1_ref, w2_ref, misc_ref, out_ref):
    # x_ref: (132, BT) bf16, rows [g1(64); g2(64); ad(4)], batch on the 128-lane axis.
    misc = misc_ref[...]                                  # (298, 1) f32
    bc = misc[_OFF_BC:_OFF_BL, :]                         # (98, 1)
    bl = misc[_OFF_BL:_OFF_B1, :]                         # (8,  1)
    b1 = misc[_OFF_B1:_OFF_LN1G, :]                       # (32, 1)
    ln1_g = misc[_OFF_LN1G:_OFF_LN1B, :]
    ln1_b = misc[_OFF_LN1B:_OFF_B2, :]
    b2 = misc[_OFF_B2:_OFF_LN2G, :]
    ln2_g = misc[_OFF_LN2G:_OFF_LN2B, :]
    ln2_b = misc[_OFF_LN2B:MISC_ROWS, :]

    xg = x_ref[0:2 * GRID_FLAT, :]                        # (128, BT) bf16
    ad = x_ref[2 * GRID_FLAT:SLAB_ROWS, :].astype(jnp.float32)   # (4, BT)

    # Both CNN branches fused: block-diag conv-as-matmul (98,128)@(128,BT) in bf16 (f32 acc),
    # ReLU, block-diag linear (8,98)@(98,BT), ReLU  ->  rows = [x1(4); x2(4)].
    c = jnp.dot(wc_ref[...], xg, preferred_element_type=jnp.float32) + bc
    c = jnp.maximum(c, 0.0).astype(jnp.bfloat16)          # (98, BT) bf16
    h12 = jnp.dot(wl_ref[...], c, preferred_element_type=jnp.float32) + bl
    h12 = jnp.maximum(h12, 0.0)                           # (8, BT) f32

    # feature_norm over the 12 features [ad; x1; x2], two-pass (centered) variance,
    # without materializing the concat (gamma/beta are pre-folded into fc1 in the wrapper).
    n = float(INPUT_SIZE)
    mu = (jnp.sum(ad, axis=0, keepdims=True)
          + jnp.sum(h12, axis=0, keepdims=True)) / n
    ad_c = ad - mu
    h_c = h12 - mu
    var = (jnp.sum(ad_c * ad_c, axis=0, keepdims=True)
           + jnp.sum(h_c * h_c, axis=0, keepdims=True)) / n
    inv = lax.rsqrt(var + LN_EPS)
    ad_n = ad_c * inv                                     # (4, BT)
    h_n = h_c * inv                                       # (8, BT)

    def layernorm_rows(v, g, b):
        m = jnp.mean(v, axis=0, keepdims=True)
        vv = jnp.mean((v - m) ** 2, axis=0, keepdims=True)
        return (v - m) * lax.rsqrt(vv + LN_EPS) * g + b

    # MLP fc1: Linear(12,32) + ReLU + LayerNorm(32)   (w1 columns: [ad(4) | x1,x2(8)])
    w1 = w1_ref[...]                                      # (32, 12) f32
    h = (jnp.dot(w1[:, :2 * NB_ADD], ad_n, preferred_element_type=jnp.float32)
         + jnp.dot(w1[:, 2 * NB_ADD:], h_n, preferred_element_type=jnp.float32)
         + b1)                                            # (32, BT)
    h = layernorm_rows(jnp.maximum(h, 0.0), ln1_g, ln1_b)
    # MLP fc2[0]: Linear(32,32) + ReLU + LayerNorm(32)   (layer_N = 1)
    h = jnp.dot(w2_ref[...], h, preferred_element_type=jnp.float32) + b2
    h = layernorm_rows(jnp.maximum(h, 0.0), ln2_g, ln2_b)

    out_ref[...] = h.astype(out_ref.dtype)                # (32, BT) lane-dense store


# ---------------- glue: parameter setup ----------------
def init_params(key):
    ks = jax.random.split(key, 12)
    s = 0.2
    p = {}
    # CNNLayer 1: Conv2d(1,1,2,1) + Linear(49, 4)
    p["k1"] = jax.random.normal(ks[0], (KSIZE, KSIZE), jnp.float32) * s
    p["bconv1"] = jax.random.normal(ks[1], (), jnp.float32) * s
    p["wl1"] = jax.random.normal(ks[2], (CONV_FLAT, FLAT_SIZE), jnp.float32) * s
    p["bl1"] = jax.random.normal(ks[3], (FLAT_SIZE,), jnp.float32) * s
    # CNNLayer 2
    p["k2"] = jax.random.normal(ks[4], (KSIZE, KSIZE), jnp.float32) * s
    p["bconv2"] = jax.random.normal(ks[5], (), jnp.float32) * s
    p["wl2"] = jax.random.normal(ks[6], (CONV_FLAT, FLAT_SIZE), jnp.float32) * s
    p["bl2"] = jax.random.normal(ks[7], (FLAT_SIZE,), jnp.float32) * s
    # feature_norm LayerNorm(12)
    p["lnf_g"] = jnp.ones((INPUT_SIZE,), jnp.float32)
    p["lnf_b"] = jnp.zeros((INPUT_SIZE,), jnp.float32)
    # MLP fc1: Linear(12, 32) + LayerNorm(32)
    p["w1"] = jax.random.normal(ks[8], (INPUT_SIZE, HIDDEN), jnp.float32) * s
    p["b1"] = jax.random.normal(ks[9], (HIDDEN,), jnp.float32) * s
    p["ln1_g"] = jnp.ones((HIDDEN,), jnp.float32)
    p["ln1_b"] = jnp.zeros((HIDDEN,), jnp.float32)
    # MLP fc2[0]: Linear(32, 32) + LayerNorm(32)
    p["w2"] = jax.random.normal(ks[10], (HIDDEN, HIDDEN), jnp.float32) * s
    p["b2"] = jax.random.normal(ks[11], (HIDDEN,), jnp.float32) * s
    p["ln2_g"] = jnp.ones((HIDDEN,), jnp.float32)
    p["ln2_b"] = jnp.zeros((HIDDEN,), jnp.float32)
    return p


def _prepare_kernel_params(p):
    """Pack / transpose weights for the batch-on-lanes (W^T @ X) kernel layout."""
    wc1 = conv_as_matrix(p["k1"])                         # (64, 49)
    wc2 = conv_as_matrix(p["k2"])
    # Fused block-diagonal conv matrix, transposed: (98, 128), bf16 for the MXU.
    wc = jnp.zeros((2 * CONV_FLAT, 2 * GRID_FLAT), jnp.float32)
    wc = wc.at[:CONV_FLAT, :GRID_FLAT].set(wc1.T)
    wc = wc.at[CONV_FLAT:, GRID_FLAT:].set(wc2.T)
    # Fused block-diagonal flatten->linear, transposed: (8, 98), bf16.
    wl = jnp.zeros((2 * FLAT_SIZE, 2 * CONV_FLAT), jnp.float32)
    wl = wl.at[:FLAT_SIZE, :CONV_FLAT].set(p["wl1"].T)
    wl = wl.at[FLAT_SIZE:, CONV_FLAT:].set(p["wl2"].T)
    # Fold feature_norm gamma/beta into fc1 (exact):  ln(x)@W+b == norm(x)@(g*W) + (beta@W + b)
    w1_eff = (p["lnf_g"][:, None] * p["w1"])              # (12, 32)
    w1_t = w1_eff.T                                       # (32, 12): cols [ad(4) | x1,x2(8)]
    b1 = p["b1"] + p["lnf_b"] @ p["w1"]                   # (32,)
    w2_t = p["w2"].T                                      # (32, 32)
    # Pack all tiny per-row operands into one (298,1) f32 misc array.
    bc = jnp.concatenate([jnp.full((CONV_FLAT,), p["bconv1"], jnp.float32),
                          jnp.full((CONV_FLAT,), p["bconv2"], jnp.float32)])
    bl = jnp.concatenate([p["bl1"], p["bl2"]])
    misc = jnp.concatenate([bc, bl, b1,
                            p["ln1_g"], p["ln1_b"],
                            p["b2"], p["ln2_g"], p["ln2_b"]]).astype(jnp.float32)
    misc = misc.reshape(MISC_ROWS, 1)
    return (wc.astype(jnp.bfloat16), wl.astype(jnp.bfloat16),
            w1_t.astype(jnp.float32), w2_t.astype(jnp.float32), misc)


def merged_model_forward(x, p, b_tile=None, out_dtype=jnp.float32):
    """x: (B, DIM_ACTOR, GRID_RES) float32 -> (B, HIDDEN).

    Batch is tiled with a grid; each tile is (SLAB_ROWS, bt) bf16 with batch on the
    128-lane axis.  b_tile / vmem_limit_bytes are chosen from the chip's VMEM capacity
    (bigger tiles + raised scoped-VMEM limit on v5e/v6e, tighter budget on v7x).
    """
    B = x.shape[0]
    if b_tile is None:
        b_tile = _DEFAULT_B_TILE

    # Balanced tiling: avoid a mostly-padded last tile, and give both v7x TCs work.
    n_tiles = -(-B // b_tile)
    if n_tiles == 1 and B > 2 * 128:
        n_tiles = 2            # free 2x on v7x (2 TCs); negligible cost on 1-TC chips
    bt = ((-(-B // n_tiles)) + 127) // 128 * 128           # round_up(cdiv(B, n_tiles), 128)
    b_pad = n_tiles * bt

    # Early bf16 cast, torch-equivalent slicing, then a single padded transposed slab write.
    xb = x.astype(jnp.bfloat16)
    grids = xb[:, NB_ADD:DIM_ACTOR, :].reshape(B, 2 * GRID_FLAT)   # (B, 128) = [g1 | g2]
    ad = xb[:, 0:NB_ADD, 0:2].reshape(B, 2 * NB_ADD)               # (B, 4)
    slab = jnp.zeros((SLAB_ROWS, b_pad), jnp.bfloat16)
    slab = slab.at[0:2 * GRID_FLAT, :B].set(grids.T)
    slab = slab.at[2 * GRID_FLAT:, :B].set(ad.T)

    wparams = _prepare_kernel_params(p)                   # (wc, wl, w1, w2, misc)

    data_spec = pl.BlockSpec((SLAB_ROWS, bt), lambda i: (0, i))
    out_spec = pl.BlockSpec((HIDDEN, bt), lambda i: (0, i))
    # Weights/misc: full-array blocks, invariant index_map -> resident in VMEM.
    in_specs = [data_spec] + [pl.BlockSpec(w.shape, lambda i: (0, 0)) for w in wparams]

    out_t = pl.pallas_call(
        merged_kernel,
        out_shape=jax.ShapeDtypeStruct((HIDDEN, b_pad), out_dtype),
        grid=(n_tiles,),
        in_specs=in_specs,
        out_specs=out_spec,
        compiler_params=pltpu.CompilerParams(
            dimension_semantics=("parallel",),            # megacore sharding on v7x
            vmem_limit_bytes=_VMEM_LIMIT),
    )(slab, *wparams)

    # Module convention is (B, HIDDEN); slice before the small transpose back.
    return out_t[:, :B].T


# ---------------- pure-JAX f32 reference (for verification) ----------------
def ref_forward(x, p):
    B = x.shape[0]

    def layernorm(v, g, b):
        mu = jnp.mean(v, axis=-1, keepdims=True)
        var = jnp.mean((v - mu) ** 2, axis=-1, keepdims=True)
        return (v - mu) / jnp.sqrt(var + LN_EPS) * g + b

    def cnn_layer(grid, k, bconv, wl, bl):
        img = grid[:, None, :, :]                                        # NCHW, C=1
        c = lax.conv_general_dilated(img, k[None, None, :, :], (STRIDE, STRIDE), "VALID",
                                     dimension_numbers=("NCHW", "OIHW", "NCHW"))
        c = jnp.maximum(c + bconv, 0.0).reshape(B, -1)                   # Flatten
        return jnp.maximum(c @ wl + bl, 0.0)

    ad = x[:, 0:NB_ADD, 0:2].reshape(B, 2 * NB_ADD)
    g1 = x[:, NB_ADD:NB_ADD + GRID_RES, :]
    g2 = x[:, NB_ADD + GRID_RES:NB_ADD + 2 * GRID_RES, :]
    x1 = cnn_layer(g1, p["k1"], p["bconv1"], p["wl1"], p["bl1"])
    x2 = cnn_layer(g2, p["k2"], p["bconv2"], p["wl2"], p["bl2"])
    feat = jnp.concatenate([ad, x1, x2], axis=1)
    feat = layernorm(feat, p["lnf_g"], p["lnf_b"])
    h = layernorm(jnp.maximum(feat @ p["w1"] + p["b1"], 0.0), p["ln1_g"], p["ln1_b"])
    h = layernorm(jnp.maximum(h @ p["w2"] + p["b2"], 0.0), p["ln2_g"], p["ln2_b"])
    return h


if __name__ == "__main__":
    key = jax.random.PRNGKey(0)
    kx, kp = jax.random.split(key)
    B = 2
    x = jax.random.normal(kx, (B, DIM_ACTOR, GRID_RES), jnp.float32)
    params = init_params(kp)

    fwd = jax.jit(merged_model_forward)
    out = jax.block_until_ready(fwd(x, params))
    assert out.shape == (B, HIDDEN)

    # Tolerance covers the bf16 MXU path (f32 accumulation); structural bugs show up as O(1) errors.
    ref = jax.block_until_ready(ref_forward(x, params))
    np.testing.assert_allclose(np.asarray(out), np.asarray(ref), rtol=4e-2, atol=4e-2)

    print("KERNEL_OK")
</pallas_src>

<mosaic_0001>
module attributes {stable_mosaic.version = 11 : i64} {
  func.func @merged_kernel(%arg0: i32, %arg1: memref<132x128xbf16, #tpu.memory_space<vmem>>, %arg2: memref<98x128xbf16, #tpu.memory_space<vmem>>, %arg3: memref<8x98xbf16, #tpu.memory_space<vmem>>, %arg4: memref<32x12xf32, #tpu.memory_space<vmem>>, %arg5: memref<32x32xf32, #tpu.memory_space<vmem>>, %arg6: memref<298x1xf32, #tpu.memory_space<vmem>>, %arg7: memref<32x128xf32, #tpu.memory_space<vmem>>) attributes {dimension_semantics = [#tpu.dimension_semantics<parallel>], iteration_bounds = array<i64: 1>, scalar_prefetch = 0 : i64, scratch_operands = 0 : i64, tpu.core_type = #tpu.core_type<tc>, window_params = [{transform_indices = @transform_0, window_bounds = array<i64: 132, 128>}, {pipeline_mode = #tpu.pipeline_mode<synchronous>, transform_indices = @transform_1, window_bounds = array<i64: 98, 128>}, {pipeline_mode = #tpu.pipeline_mode<synchronous>, transform_indices = @transform_2, window_bounds = array<i64: 8, 98>}, {pipeline_mode = #tpu.pipeline_mode<synchronous>, transform_indices = @transform_3, window_bounds = array<i64: 32, 12>}, {pipeline_mode = #tpu.pipeline_mode<synchronous>, transform_indices = @transform_4, window_bounds = array<i64: 32, 32>}, {pipeline_mode = #tpu.pipeline_mode<synchronous>, transform_indices = @transform_5, window_bounds = array<i64: 298, 1>}, {transform_indices = @transform_6, window_bounds = array<i64: 32, 128>}]} {
    %c0 = arith.constant 0 : index
    %c0_0 = arith.constant 0 : index
    %0 = vector.load %arg6[%c0, %c0_0] : memref<298x1xf32, #tpu.memory_space<vmem>>, vector<298x1xf32>
    %1 = vector.extract_strided_slice %0 {offsets = [0, 0], sizes = [98, 1], strides = [1, 1]} : vector<298x1xf32> to vector<98x1xf32>
    %2 = vector.extract_strided_slice %0 {offsets = [98, 0], sizes = [8, 1], strides = [1, 1]} : vector<298x1xf32> to vector<8x1xf32>
    %3 = vector.extract_strided_slice %0 {offsets = [106, 0], sizes = [32, 1], strides = [1, 1]} : vector<298x1xf32> to vector<32x1xf32>
    %4 = vector.extract_strided_slice %0 {offsets = [138, 0], sizes = [32, 1], strides = [1, 1]} : vector<298x1xf32> to vector<32x1xf32>
    %5 = vector.extract_strided_slice %0 {offsets = [170, 0], sizes = [32, 1], strides = [1, 1]} : vector<298x1xf32> to vector<32x1xf32>
    %6 = vector.extract_strided_slice %0 {offsets = [202, 0], sizes = [32, 1], strides = [1, 1]} : vector<298x1xf32> to vector<32x1xf32>
    %7 = vector.extract_strided_slice %0 {offsets = [234, 0], sizes = [32, 1], strides = [1, 1]} : vector<298x1xf32> to vector<32x1xf32>
    %8 = vector.extract_strided_slice %0 {offsets = [266, 0], sizes = [32, 1], strides = [1, 1]} : vector<298x1xf32> to vector<32x1xf32>
    %c0_1 = arith.constant 0 : index
    %c0_2 = arith.constant 0 : index
    %9 = vector.load %arg1[%c0_1, %c0_2] : memref<132x128xbf16, #tpu.memory_space<vmem>>, vector<128x128xbf16>
    %c128 = arith.constant 128 : index
    %c0_3 = arith.constant 0 : index
    %10 = vector.load %arg1[%c128, %c0_3] : memref<132x128xbf16, #tpu.memory_space<vmem>>, vector<4x128xbf16>
    %11 = arith.extf %10 : vector<4x128xbf16> to vector<4x128xf32>
    %c0_4 = arith.constant 0 : index
    %c0_5 = arith.constant 0 : index
    %12 = vector.load %arg2[%c0_4, %c0_5] : memref<98x128xbf16, #tpu.memory_space<vmem>>, vector<98x128xbf16>
    %cst = arith.constant dense<0.000000e+00> : vector<98x128xf32>
    %13 = tpu.matmul %12, %9, %cst {dimension_numbers = #tpu.dot_dimension_numbers<[1], [0], [0], [1], [0, 0, 1, 1], [], []>} : vector<98x128xbf16>, vector<128x128xbf16>, vector<98x128xf32> -> vector<98x128xf32>
    %14 = vector.broadcast %1 : vector<98x1xf32> to vector<98x128xf32>
    %15 = arith.addf %13, %14 : vector<98x128xf32>
    %cst_6 = arith.constant 0.000000e+00 : f32
    %16 = vector.broadcast %cst_6 : f32 to vector<98x128xf32>
    %17 = arith.maximumf %15, %16 : vector<98x128xf32>
    %18 = arith.truncf %17 : vector<98x128xf32> to vector<98x128xbf16>
    %c0_7 = arith.constant 0 : index
    %c0_8 = arith.constant 0 : index
    %19 = vector.load %arg3[%c0_7, %c0_8] : memref<8x98xbf16, #tpu.memory_space<vmem>>, vector<8x98xbf16>
    %cst_9 = arith.constant dense<0.000000e+00> : vector<8x128xf32>
    %20 = tpu.matmul %19, %18, %cst_9 {dimension_numbers = #tpu.dot_dimension_numbers<[1], [0], [0], [1], [0, 0, 1, 1], [], []>} : vector<8x98xbf16>, vector<98x128xbf16>, vector<8x128xf32> -> vector<8x128xf32>
    %21 = vector.broadcast %2 : vector<8x1xf32> to vector<8x128xf32>
    %22 = arith.addf %20, %21 : vector<8x128xf32>
    %cst_10 = arith.constant 0.000000e+00 : f32
    %23 = vector.broadcast %cst_10 : f32 to vector<8x128xf32>
    %24 = arith.maximumf %22, %23 : vector<8x128xf32>
    %cst_11 = arith.constant dense<0.000000e+00> : vector<128xf32>
    %25 = vector.multi_reduction <add>, %11, %cst_11 [0] : vector<4x128xf32> to vector<128xf32>
    %26 = vector.shape_cast %25 : vector<128xf32> to vector<1x128xf32>
    %cst_12 = arith.constant dense<0.000000e+00> : vector<128xf32>
    %27 = vector.multi_reduction <add>, %24, %cst_12 [0] : vector<8x128xf32> to vector<128xf32>
    %28 = vector.shape_cast %27 : vector<128xf32> to vector<1x128xf32>
    %29 = arith.addf %26, %28 : vector<1x128xf32>
    %cst_13 = arith.constant 1.200000e+01 : f32
    %30 = vector.broadcast %cst_13 : f32 to vector<1x128xf32>
    %31 = arith.divf %29, %30 : vector<1x128xf32>
    %32 = vector.broadcast %31 : vector<1x128xf32> to vector<4x128xf32>
    %33 = arith.subf %11, %32 : vector<4x128xf32>
    %34 = vector.broadcast %31 : vector<1x128xf32> to vector<8x128xf32>
    %35 = arith.subf %24, %34 : vector<8x128xf32>
    %36 = arith.mulf %33, %33 : vector<4x128xf32>
    %cst_14 = arith.constant dense<0.000000e+00> : vector<128xf32>
    %37 = vector.multi_reduction <add>, %36, %cst_14 [0] : vector<4x128xf32> to vector<128xf32>
    %38 = vector.shape_cast %37 : vector<128xf32> to vector<1x128xf32>
    %39 = arith.mulf %35, %35 : vector<8x128xf32>
    %cst_15 = arith.constant dense<0.000000e+00> : vector<128xf32>
    %40 = vector.multi_reduction <add>, %39, %cst_15 [0] : vector<8x128xf32> to vector<128xf32>
    %41 = vector.shape_cast %40 : vector<128xf32> to vector<1x128xf32>
    %42 = arith.addf %38, %41 : vector<1x128xf32>
    %cst_16 = arith.constant 1.200000e+01 : f32
    %43 = vector.broadcast %cst_16 : f32 to vector<1x128xf32>
    %44 = arith.divf %42, %43 : vector<1x128xf32>
    %cst_17 = arith.constant 9.99999974E-6 : f32
    %45 = vector.broadcast %cst_17 : f32 to vector<1x128xf32>
    %46 = arith.addf %44, %45 : vector<1x128xf32>
    %47 = math.rsqrt %46 : vector<1x128xf32>
    %48 = vector.broadcast %47 : vector<1x128xf32> to vector<4x128xf32>
    %49 = arith.mulf %33, %48 : vector<4x128xf32>
    %50 = vector.broadcast %47 : vector<1x128xf32> to vector<8x128xf32>
    %51 = arith.mulf %35, %50 : vector<8x128xf32>
    %c0_18 = arith.constant 0 : index
    %c0_19 = arith.constant 0 : index
    %52 = vector.load %arg4[%c0_18, %c0_19] : memref<32x12xf32, #tpu.memory_space<vmem>>, vector<32x12xf32>
    %53 = vector.extract_strided_slice %52 {offsets = [0, 0], sizes = [32, 4], strides = [1, 1]} : vector<32x12xf32> to vector<32x4xf32>
    %cst_20 = arith.constant dense<0.000000e+00> : vector<32x128xf32>
    %54 = tpu.matmul %53, %49, %cst_20 {dimension_numbers = #tpu.dot_dimension_numbers<[1], [0], [0], [1], [0, 0, 1, 1], [], []>} : vector<32x4xf32>, vector<4x128xf32>, vector<32x128xf32> -> vector<32x128xf32>
    %55 = vector.extract_strided_slice %52 {offsets = [0, 4], sizes = [32, 8], strides = [1, 1]} : vector<32x12xf32> to vector<32x8xf32>
    %cst_21 = arith.constant dense<0.000000e+00> : vector<32x128xf32>
    %56 = tpu.matmul %55, %51, %cst_21 {dimension_numbers = #tpu.dot_dimension_numbers<[1], [0], [0], [1], [0, 0, 1, 1], [], []>} : vector<32x8xf32>, vector<8x128xf32>, vector<32x128xf32> -> vector<32x128xf32>
    %57 = arith.addf %54, %56 : vector<32x128xf32>
    %58 = vector.broadcast %3 : vector<32x1xf32> to vector<32x128xf32>
    %59 = arith.addf %57, %58 : vector<32x128xf32>
    %cst_22 = arith.constant 0.000000e+00 : f32
    %60 = vector.broadcast %cst_22 : f32 to vector<32x128xf32>
    %61 = arith.maximumf %59, %60 : vector<32x128xf32>
    %cst_23 = arith.constant dense<0.000000e+00> : vector<128xf32>
    %62 = vector.multi_reduction <add>, %61, %cst_23 [0] : vector<32x128xf32> to vector<128xf32>
    %63 = vector.shape_cast %62 : vector<128xf32> to vector<1x128xf32>
    %cst_24 = arith.constant 3.200000e+01 : f32
    %64 = vector.broadcast %cst_24 : f32 to vector<1x128xf32>
    %65 = arith.divf %63, %64 : vector<1x128xf32>
    %66 = vector.broadcast %65 : vector<1x128xf32> to vector<32x128xf32>
    %67 = arith.subf %61, %66 : vector<32x128xf32>
    %68 = arith.mulf %67, %67 : vector<32x128xf32>
    %cst_25 = arith.constant dense<0.000000e+00> : vector<128xf32>
    %69 = vector.multi_reduction <add>, %68, %cst_25 [0] : vector<32x128xf32> to vector<128xf32>
    %70 = vector.shape_cast %69 : vector<128xf32> to vector<1x128xf32>
    %cst_26 = arith.constant 3.200000e+01 : f32
    %71 = vector.broadcast %cst_26 : f32 to vector<1x128xf32>
    %72 = arith.divf %70, %71 : vector<1x128xf32>
    %73 = vector.broadcast %65 : vector<1x128xf32> to vector<32x128xf32>
    %74 = arith.subf %61, %73 : vector<32x128xf32>
    %cst_27 = arith.constant 9.99999974E-6 : f32
    %75 = vector.broadcast %cst_27 : f32 to vector<1x128xf32>
    %76 = arith.addf %72, %75 : vector<1x128xf32>
    %77 = math.rsqrt %76 : vector<1x128xf32>
    %78 = vector.broadcast %77 : vector<1x128xf32> to vector<32x128xf32>
    %79 = arith.mulf %74, %78 : vector<32x128xf32>
    %80 = vector.broadcast %4 : vector<32x1xf32> to vector<32x128xf32>
    %81 = arith.mulf %79, %80 : vector<32x128xf32>
    %82 = vector.broadcast %5 : vector<32x1xf32> to vector<32x128xf32>
    %83 = arith.addf %81, %82 : vector<32x128xf32>
    %c0_28 = arith.constant 0 : index
    %c0_29 = arith.constant 0 : index
    %84 = vector.load %arg5[%c0_28, %c0_29] : memref<32x32xf32, #tpu.memory_space<vmem>>, vector<32x32xf32>
    %cst_30 = arith.constant dense<0.000000e+00> : vector<32x128xf32>
    %85 = tpu.matmul %84, %83, %cst_30 {dimension_numbers = #tpu.dot_dimension_numbers<[1], [0], [0], [1], [0, 0, 1, 1], [], []>} : vector<32x32xf32>, vector<32x128xf32>, vector<32x128xf32> -> vector<32x128xf32>
    %86 = vector.broadcast %6 : vector<32x1xf32> to vector<32x128xf32>
    %87 = arith.addf %85, %86 : vector<32x128xf32>
    %cst_31 = arith.constant 0.000000e+00 : f32
    %88 = vector.broadcast %cst_31 : f32 to vector<32x128xf32>
    %89 = arith.maximumf %87, %88 : vector<32x128xf32>
    %cst_32 = arith.constant dense<0.000000e+00> : vector<128xf32>
    %90 = vector.multi_reduction <add>, %89, %cst_32 [0] : vector<32x128xf32> to vector<128xf32>
    %91 = vector.shape_cast %90 : vector<128xf32> to vector<1x128xf32>
    %cst_33 = arith.constant 3.200000e+01 : f32
    %92 = vector.broadcast %cst_33 : f32 to vector<1x128xf32>
    %93 = arith.divf %91, %92 : vector<1x128xf32>
    %94 = vector.broadcast %93 : vector<1x128xf32> to vector<32x128xf32>
    %95 = arith.subf %89, %94 : vector<32x128xf32>
    %96 = arith.mulf %95, %95 : vector<32x128xf32>
    %cst_34 = arith.constant dense<0.000000e+00> : vector<128xf32>
    %97 = vector.multi_reduction <add>, %96, %cst_34 [0] : vector<32x128xf32> to vector<128xf32>
    %98 = vector.shape_cast %97 : vector<128xf32> to vector<1x128xf32>
    %cst_35 = arith.constant 3.200000e+01 : f32
    %99 = vector.broadcast %cst_35 : f32 to vector<1x128xf32>
    %100 = arith.divf %98, %99 : vector<1x128xf32>
    %101 = vector.broadcast %93 : vector<1x128xf32> to vector<32x128xf32>
    %102 = arith.subf %89, %101 : vector<32x128xf32>
    %cst_36 = arith.constant 9.99999974E-6 : f32
    %103 = vector.broadcast %cst_36 : f32 to vector<1x128xf32>
    %104 = arith.addf %100, %103 : vector<1x128xf32>
    %105 = math.rsqrt %104 : vector<1x128xf32>
    %106 = vector.broadcast %105 : vector<1x128xf32> to vector<32x128xf32>
    %107 = arith.mulf %102, %106 : vector<32x128xf32>
    %108 = vector.broadcast %7 : vector<32x1xf32> to vector<32x128xf32>
    %109 = arith.mulf %107, %108 : vector<32x128xf32>
    %110 = vector.broadcast %8 : vector<32x1xf32> to vector<32x128xf32>
    %111 = arith.addf %109, %110 : vector<32x128xf32>
    %c0_37 = arith.constant 0 : index
    %c0_38 = arith.constant 0 : index
    %112 = vector.load %arg7[%c0_37, %c0_38] : memref<32x128xf32, #tpu.memory_space<vmem>>, vector<32x128xf32>
    tpu.vector_store %arg7[%c0_37, %c0_38], %111 {strides = array<i32>} : memref<32x128xf32, #tpu.memory_space<vmem>>, vector<32x128xf32>,
    return
  }
  func.func @transform_0(%arg0: i32) -> (i32, i32) {
    %c0_i32 = arith.constant 0 : i32
    %c0_i32_0 = arith.constant 0 : i32
    return %c0_i32, %arg0 : i32, i32
  }
  func.func @transform_1(%arg0: i32) -> (i32, i32) {
    %c0_i32 = arith.constant 0 : i32
    %c0_i32_0 = arith.constant 0 : i32
    %c0_i32_1 = arith.constant 0 : i32
    return %c0_i32, %c0_i32_0 : i32, i32
  }
  func.func @transform_2(%arg0: i32) -> (i32, i32) {
    %c0_i32 = arith.constant 0 : i32
    %c0_i32_0 = arith.constant 0 : i32
    %c0_i32_1 = arith.constant 0 : i32
    return %c0_i32, %c0_i32_0 : i32, i32
  }
  func.func @transform_3(%arg0: i32) -> (i32, i32) {
    %c0_i32 = arith.constant 0 : i32
    %c0_i32_0 = arith.constant 0 : i32
    %c0_i32_1 = arith.constant 0 : i32
    return %c0_i32, %c0_i32_0 : i32, i32
  }
  func.func @transform_4(%arg0: i32) -> (i32, i32) {
    %c0_i32 = arith.constant 0 : i32
    %c0_i32_0 = arith.constant 0 : i32
    %c0_i32_1 = arith.constant 0 : i32
    return %c0_i32, %c0_i32_0 : i32, i32
  }
  func.func @transform_5(%arg0: i32) -> (i32, i32) {
    %c0_i32 = arith.constant 0 : i32
    %c0_i32_0 = arith.constant 0 : i32
    %c0_i32_1 = arith.constant 0 : i32
    return %c0_i32, %c0_i32_0 : i32, i32
  }
  func.func @transform_6(%arg0: i32) -> (i32, i32) {
    %c0_i32 = arith.constant 0 : i32
    %c0_i32_0 = arith.constant 0 : i32
    return %c0_i32, %arg0 : i32, i32
  }
}

</mosaic_0001>

<bundles_post_ra>
// kernel: merged_model_forward.1
= control target key start
LH: loop header
LB: loop body
LE: loop exit
PB: predicated region body
PF: predicated region fallthrough
CT: control target
= control target key end

     0   :  { %v951_v0 = vmov 0   ;;  %s952_s25 = smov 124   ;;  %vm314_vm0 = vcmask 1045504   ;;  %vm323_vm1 = vcmask 1040384   ;;  %vm319_vm2 = vcmask 801792   ;;  %s1376_s5 = inlined_call_operand.vmem [shape: f32[298,1], index: 5, kind: input, shape index: {}]   ;;  %s1377_s0 = inlined_call_operand.vmem [shape: bf16[132,128], index: 0, kind: input, shape index: {}]   ;;  %s1378_s1 = inlined_call_operand.vmem [shape: bf16[98,128], index: 1, kind: input, shape index: {}]   ;;  %s1379_s3 = inlined_call_operand.vmem [shape: f32[32,12], index: 3, kind: input, shape index: {}]   ;;  %s1380_s2 = inlined_call_operand.vmem [shape: bf16[8,98], index: 2, kind: input, shape index: {}]   ;;  %s1381_s4 = inlined_call_operand.vmem [shape: f32[32,32], index: 4, kind: input, shape index: {}]   ;;  %s1382_s6 = inlined_call_operand.vmem [shape: f32[32,128], index: 6, kind: output, shape index: {}]  }
   0x1   :  { %940 = vset.pattern.permute.xlu2 %v951_v0  ;;  %939 = vset.pattern.permute.xlu1 %v951_v0  ;;  %v36_v1 = vld [vmem:[%s1376_s5 + $0x60] sm:$0xff]  ;;  %v35_v2 = vld [vmem:[%s1376_s5 + $0x58] sm:$0xff]  ;;  %v33_v3 = vld [vmem:[%s1376_s5 + $0x48] sm:$0xff]  ;;  %vm341_vm3 = vcmask 1043456   ;;  %vm412_vm8 = vcmask 64512   ;;  %vm450_vm9 = vcmask 31744  }
   0x2   :  { %938 = vset.pattern.permute.xlu0 %v951_v0  ;;  %150 = vperm.xlu1 %939, %v35_v2   ;;  %v911_v4 = vld [vmem:[%s1377_s0 + $0x38] sm:$0xff]  ;;  %v910_v5 = vld [vmem:[%s1377_s0 + $0x30] sm:$0xff]  ;;  %v32_v6 = vld [vmem:[%s1376_s5 + $0x40] sm:$0xff]  ;;  %vm673_vm14 = vcmask 261120  }
   0x3   :  { %155 = vperm.xlu0 %938, %v36_v1   ;;  %140 = vperm.xlu2 %940, %v33_v3   ;;  %v34_v7 = vld [vmem:[%s1376_s5 + $0x50] sm:$0xff]  ;;  %v909_v9 = vld [vmem:[%s1377_s0 + $0x28] sm:$0xff]  ;;  %v908_v10 = vld [vmem:[%s1377_s0 + $0x20] sm:$0xff] }
   0x4   :  { %246 = vmatpush.bf16.msra.mxu0 %v911_v4  ;;  %918 = vmatpush.bf16.msra.mxu1 %v911_v4  ;;  %v30_v8 = vld [vmem:[%s1376_s5 + $0x30] sm:$0xff]  ;;  %v28_v11 = vld [vmem:[%s1376_s5 + $0x20] sm:$0xff]  ;;  %v31_v12 = vld [vmem:[%s1376_s5 + $0x38] sm:$0xff] }
   0x5   :  { %919 = vmatpush.bf16.msra.mxu3 %v911_v4  ;;  %v29_v13 = vld [vmem:[%s1376_s5 + $0x28] sm:$0xff]  ;;  %v907_v14 = vld [vmem:[%s1377_s0 + $0x18] sm:$0xff]  ;;  %v906_v15 = vld [vmem:[%s1377_s0 + $0x10] sm:$0xff] }
   0x6   :  { %v27_v16 = vld [vmem:[%s1376_s5 + $0x18] sm:$0xff]  ;;  %v26_v17 = vld [vmem:[%s1376_s5 + $0x10] sm:$0xff]  ;;  %v24_v18 = vld [vmem:[%s1376_s5] sm:$0xff] }
   0x7   :  { %v905_v19 = vld [vmem:[%s1377_s0 + $0x8] sm:$0xff]  ;;  %v92_v20 = vld [vmem:[%s1378_s1 + $0x30] sm:$0x1]  ;;  %v904_v21 = vld [vmem:[%s1377_s0] sm:$0xff] }
   0x8   :  { %247 = vmatpush.bf16.msra.mxu0 %v910_v5  ;;  %920 = vmatpush.bf16.msra.mxu1 %v910_v5  ;;  %v183_v22 = vunpack.c.l.b16 %v92_v20  ;;  %v37_v23 = vld [vmem:[%s1376_s5 + $0x68] sm:$0xff]  ;;  %v1062_v25 = vld [vmem:[%s1379_s3] sm:$0xff]  ;;  %v915_v27 = vld [vmem:[%s1378_s1 + $0x18] sm:$0xff] }
   0x9   :  { %921 = vmatpush.bf16.msra.mxu3 %v910_v5  ;;  %v25_v24 = vld [vmem:[%s1376_s5 + $0x8] sm:$0xff]  ;;  %v912_v26 = vld [vmem:[%s1378_s1] sm:$0xff]  ;;  %v1074_v29 = vld [vmem:[%s1379_s3 + $0x10] sm:$0xff] }
   0xa   :  { %135 = vperm.xlu1 %939, %v32_v6   ;;  %v190_v28 = vpack.c.b16 %v183_v22, %v183_v22  ;;  %v1079_v30 = vld [vmem:[%s1379_s3 + $0x8] sm:$0xff]  ;;  %v1084_v31 = vld [vmem:[%s1379_s3 + $0x18] sm:$0xff]  ;;  %v38_v33 = vld [vmem:[%s1376_s5 + $0x70] sm:$0xff] }
   0xb   :  { %145 = vperm.xlu0 %938, %v34_v7   ;;  %125 = vperm.xlu2 %940, %v30_v8   ;;  %v39_v32 = vld [vmem:[%s1376_s5 + $0x78] sm:$0xff]  ;;  %v40_v34 = vld [vmem:[%s1376_s5 + $0x80] sm:$0xff]  ;;  %v913_v35 = vld [vmem:[%s1378_s1 + $0x8] sm:$0xff] }
   0xc   :  { %248 = vmatpush.bf16.msra.mxu0 %v909_v9  ;;  %922 = vmatpush.bf16.msra.mxu1 %v909_v9  ;;  %v916_v36 = vld [vmem:[%s1378_s1 + $0x20] sm:$0xff]  ;;  %v41_v38 = vld [vmem:[%s1376_s5 + $0x88] sm:$0xff]  ;;  %v43_v41 = vld [vmem:[%s1376_s5 + $0x98] sm:$0xff] }
   0xd   :  { %923 = vmatpush.bf16.msra.mxu3 %v909_v9  ;;  %v44_v37 = vld [vmem:[%s1376_s5 + $0xa0] sm:$0xff]  ;;  %v45_v39 = vld [vmem:[%s1376_s5 + $0xa8] sm:$0xff]  ;;  %v914_v43 = vld [vmem:[%s1378_s1 + $0x10] sm:$0xff] }
   0xe   :  { %v48_v40 = vld [vmem:[%s1376_s5 + $0xc0] sm:$0xff]  ;;  %v49_v42 = vld [vmem:[%s1376_s5 + $0xc8] sm:$0xff]  ;;  %v47_v45 = vld [vmem:[%s1376_s5 + $0xb8] sm:$0xff] }
   0xf   :  { %v917_v44 = vld [vmem:[%s1378_s1 + $0x28] sm:$0xff]  ;;  %v42_v46 = vld [vmem:[%s1376_s5 + $0x90] sm:$0xff]  ;;  %v51_v48 = vld [vmem:[%s1376_s5 + $0xd8] sm:$0xff] }
  0x10   :  { %249 = vmatpush.bf16.msra.mxu0 %v908_v10  ;;  %924 = vmatpush.bf16.msra.mxu1 %v908_v10  ;;  %v46_v47 = vld [vmem:[%s1376_s5 + $0xb0] sm:$0xff]  ;;  %v52_v50 = vld [vmem:[%s1376_s5 + $0xe0] sm:$0xff]  ;;  %v53_v52 = vld [vmem:[%s1376_s5 + $0xe8] sm:$0xff] }
  0x11   :  { %925 = vmatpush.bf16.msra.mxu3 %v908_v10  ;;  %v50_v49 = vld [vmem:[%s1376_s5 + $0xd0] sm:$0xff]  ;;  %v55_v53 = vld [vmem:[%s1376_s5 + $0xf8] sm:$0xff]  ;;  %v57_v54 = vld [vmem:[%s1376_s5 + $0x108] sm:$0xff] }
  0x12   :  { %115 = vperm.xlu1 %939, %v28_v11   ;;  %v54_v51 = vld [vmem:[%s1376_s5 + $0xf0] sm:$0xff]  ;;  %v56_v55 = vld [vmem:[%s1376_s5 + $0x100] sm:$0xff]  ;;  %v59_v58 = vld [vmem:[%s1376_s5 + $0x118] sm:$0xff] }
  0x13   :  { %130 = vperm.xlu0 %938, %v31_v12   ;;  %120 = vperm.xlu2 %940, %v29_v13   ;;  %v58_v56 = vld [vmem:[%s1376_s5 + $0x110] sm:$0xff]  ;;  %v60_v57 = vld [vmem:[%s1376_s5 + $0x120] sm:$0xff]  ;;  %v61_v59 = vld [vmem:[%s1376_s5 + $0x128] sm:$0x3] }
  0x14   :  { %250 = vmatpush.bf16.msra.mxu0 %v907_v14  ;;  %926 = vmatpush.bf16.msra.mxu1 %v907_v14 }
  0x15   :  { %927 = vmatpush.bf16.msra.mxu3 %v907_v14 }
  0x18   :  { %251 = vmatpush.bf16.msra.mxu0 %v906_v15  ;;  %928 = vmatpush.bf16.msra.mxu1 %v906_v15 }
  0x19   :  { %929 = vmatpush.bf16.msra.mxu3 %v906_v15 }
  0x1a   :  { %110 = vperm.xlu1 %939, %v27_v16  }
  0x1b   :  { %105 = vperm.xlu0 %938, %v26_v17   ;;  %95 = vperm.xlu2 %940, %v24_v18  }
  0x1c   :  { %252 = vmatpush.bf16.msra.mxu0 %v905_v19  ;;  %930 = vmatpush.bf16.msra.mxu1 %v905_v19 }
  0x1d   :  { %931 = vmatpush.bf16.msra.mxu3 %v905_v19 }
  0x20   :  { %253 = vmatpush.bf16.msra.mxu0 %v904_v21  ;;  %932 = vmatpush.bf16.msra.mxu1 %v904_v21 }
  0x21   :  { %933 = vmatpush.bf16.msra.mxu3 %v904_v21 }
  0x22   :  { %312 = vperm.xlu1 %939, %v37_v23  }
  0x23   :  { %100 = vperm.xlu0 %938, %v25_v24   ;;  %404 = vrot.lane.b32.xlu2 %v1062_v25, %s952_s25 }
  0x24   :  { %254 = vmatmul.bf16.vlgmr.msra.gmra.mxu0 %v912_v26  ;;  %269 = vmatmul.bf16.vlgmr.msra.gmra.mxu1 %v915_v27 }
  0x25   :  { %284 = vmatmul.bf16.vlgmr.msra.gmra.mxu3 %v190_v28 }
  0x2a   :  { %408 = vrot.lane.b32.xlu1 %v1074_v29, %s952_s25 }
  0x2b   :  { %406 = vrot.lane.b32.xlu0 %v1079_v30, %s952_s25  ;;  %410 = vrot.lane.b32.xlu2 %v1084_v31, %s952_s25 }
  0x32   :  { %497 = vperm.xlu1 %939, %v39_v32  }
  0x33   :  { %493 = vperm.xlu0 %938, %v38_v33   ;;  %501 = vperm.xlu2 %940, %v40_v34  }
  0x34   :  { %259 = vmatmul.bf16.gmra.mxu0 %v913_v35  ;;  %274 = vmatmul.bf16.gmra.mxu1 %v916_v36 }
  0x3a   :  { %587 = vperm.xlu1 %939, %v44_v37  }
  0x3b   :  { %505 = vperm.xlu0 %938, %v41_v38   ;;  %591 = vperm.xlu2 %940, %v45_v39  }
  0x42   :  { %619 = vperm.xlu1 %939, %v48_v40  }
  0x43   :  { %583 = vperm.xlu0 %938, %v43_v41   ;;  %623 = vperm.xlu2 %940, %v49_v42  }
  0x44   :  { %264 = vmatmul.bf16.gmra.mxu0 %v914_v43  ;;  %279 = vmatmul.bf16.gmra.mxu1 %v917_v44 }
  0x4a   :  { %615 = vperm.xlu1 %939, %v47_v45  }
  0x4b   :  { %579 = vperm.xlu0 %938, %v42_v46   ;;  %611 = vperm.xlu2 %940, %v46_v47  }
  0x52   :  { %651 = vperm.xlu1 %939, %v51_v48  }
  0x53   :  { %647 = vperm.xlu0 %938, %v50_v49   ;;  %655 = vperm.xlu2 %940, %v52_v50  }
  0x5a   :  { %764 = vperm.xlu1 %939, %v54_v51  }
  0x5b   :  { %659 = vperm.xlu0 %938, %v53_v52   ;;  %768 = vperm.xlu2 %940, %v55_v53  }
  0x5d   :  { %v141_v60 = vpop.permute.xlu2 %140 }
  0x62   :  { %776 = vperm.xlu1 %939, %v57_v54  }
  0x63   :  { %772 = vperm.xlu0 %938, %v56_v55   ;;  %796 = vperm.xlu2 %940, %v58_v56  }
  0x65   :  { %v1175_v1 = vpop.permute.xlu2 %125 }
  0x6a   :  { %804 = vperm.xlu1 %939, %v60_v57  }
  0x6b   :  { %800 = vperm.xlu0 %938, %v59_v58   ;;  %808 = vperm.xlu2 %940, %v61_v59  }
  0x6d   :  { %v1179_v4 = vpop.permute.xlu2 %120 }
  0x74   :  { %v151_v61 = vpop.permute.xlu1 %150 }
  0x75   :  { %v1173_v62 = vpop.permute.xlu0 %155  ;;  %v1185_v7 = vpop.permute.xlu2 %95 }
  0x7c   :  { %v136_v63 = vpop.permute.xlu1 %135 }
  0x7d   :  { %v146_v0 = vpop.permute.xlu0 %145  ;;  %v1191_v10 = vpop.permute.xlu2 %404 }
  0x84   :  { %v1177_v2 = vpop.permute.xlu1 %115 }
  0x85   :  { %v131_v3 = vpop.permute.xlu0 %130  ;;  %v1204_v18 = vpop.permute.xlu2 %410 }
  0x8c   :  { %v1181_v5 = vpop.permute.xlu1 %110 }
  0x8d   :  { %v1183_v6 = vpop.permute.xlu0 %105  ;;  %v1221_v34 = vpop.permute.xlu2 %501 }
  0x94   :  { %v1187_v8 = vpop.permute.xlu1 %312 }
  0x95   :  { %v1189_v9 = vpop.permute.xlu0 %100  ;;  %v316_v15 = vrot.slane %v1187_v8, 2  ;;  %v1227_v41 = vpop.permute.xlu2 %591 }
  0x9c   :  { %v1193_v11 = vpop.permute.xlu1 %408 }
  0x9d   :  { %v1195_v12 = vpop.permute.xlu0 %406  ;;  %v1242_v49 = vpop.permute.xlu2 %623 }
  0x9e   :  { %v1387_v53 = vrot.slane %v1242_v49, 2 }
  0xa1   :  { %v1197_v13 = vpop.f32.mrf.mxu0  ;;  %v270_v14 = vpop.f32.mrf.mxu1 }
  0xa4   :  { %v1200_v16 = vpop.permute.xlu1 %497 }
  0xa5   :  { %v1202_v17 = vpop.permute.xlu0 %493 }
  0xa6   :  { %v1385_v19 = vrot.slane %v1202_v17, 2 }
  0xa8   :  { %v285_v20 = vpop.f32.mrf.mxu3  ;;  %v1212_v21 = vsel %vm314_vm0, %v316_v15, %v1385_v19 }
  0xa9   :  { %v1214_v22 = vpop.f32.mrf.mxu0  ;;  %v272_v23 = vpop.f32.mrf.mxu1  ;;  %v286_v24 = vadd.f32 %v285_v20, %v1173_v62 }
  0xab   :  { %v301_v26 = vmax.f32 %v286_v24, 0.0 }
  0xac   :  { %v1217_v27 = vpop.permute.xlu1 %587 }
  0xad   :  { %v1219_v28 = vpop.permute.xlu0 %505  ;;  %v308_v32 = vpack.c.bf16 %v301_v26, %v301_v26 }
  0xae   :  { %v1384_v43 = vrot.slane %v1219_v28, 2 }
  0xaf   :  { %v325_v33 = vsel %vm323_vm1, %v308_v32, 0 }
  0xb0   :  { %v287_v35 = vpop.f32.mrf.mxu3  ;;  %328 = vmatpush.bf16.msrb.mxu1 %v325_v33 }
  0xb1   :  { %v260_v36 = vpop.f32.mrf.mxu0  ;;  %v275_v37 = vpop.f32.mrf.mxu1 }
  0xb2   :  { %v276_v20 = vadd.f32 %v275_v37, %v136_v63 }
  0xb4   :  { %v1223_v38 = vpop.permute.xlu1 %619 }
  0xb5   :  { %v1225_v39 = vpop.permute.xlu0 %583 }
  0xb9   :  { %v277_v40 = vpop.f32.mrf.mxu1  ;;  %v262_v42 = vpop.f32.mrf.mxu0 }
  0xba   :  { %v278_v58 = vadd.f32 %v277_v40, %v141_v60  ;;  %v261_v40 = vadd.f32 %v260_v36, %v1183_v6 }
  0xbc   :  { %v1230_v44 = vpop.permute.xlu1 %615 }
  0xbd   :  { %v1232_v45 = vpop.permute.xlu0 %579 }
  0xbe   :  { %v1383_v46 = vrot.slane %v1232_v45, 2 }
  0xc0   :  { %v1240_v47 = vsel %vm314_vm0, %v1384_v43, %v1383_v46 }
  0xc1   :  { %v280_v48 = vpop.f32.mrf.mxu1  ;;  %v265_v51 = vpop.f32.mrf.mxu0 }
  0xc2   :  { %v281_v55 = vadd.f32 %v280_v48, %v146_v0  ;;  %v273_v0 = vadd.f32 %v272_v23, %v131_v3  ;;  %v298_v48 = vmax.f32 %v278_v58, 0.0  ;;  %v266_v37 = vadd.f32 %v265_v51, %v1177_v2 }
  0xc3   :  { %v256_v58 = vadd.f32 %v1197_v13, %v1185_v7  ;;  %v78_v7 = vld [vmem:[%s1377_s0 + $0x40] sm:$0x3] }
  0xc4   :  { %v1244_v50 = vpop.permute.xlu1 %651  ;;  %v299_v24 = vmax.f32 %v281_v55, 0.0 }
  0xc5   :  { %v1246_v52 = vpop.permute.xlu0 %647  ;;  %v289_v2 = vmax.f32 %v256_v58, 0.0 }
  0xc6   :  { %v1386_v54 = vrot.slane %v1246_v52, 2 }
  0xc8   :  { %v1255_v56 = vsel %vm314_vm0, %v1387_v53, %v1386_v54  ;;  %v271_v54 = vadd.f32 %v270_v14, %v1175_v1  ;;  %v297_v53 = vmax.f32 %v276_v20, 0.0  ;;  %v263_v1 = vadd.f32 %v262_v42, %v1181_v5  ;;  %v309_v5 = vld [vmem:[%s1380_s2] sm:$0xf] }
  0xc9   :  { %v282_v57 = vpop.f32.mrf.mxu1  ;;  %v267_v19 = vpop.f32.mrf.mxu0  ;;  %v315_v42 = vrot.slane %v1173_v62, 2 }
  0xca   :  { %v283_v59 = vadd.f32 %v282_v57, %v151_v61  ;;  %v296_v61 = vmax.f32 %v273_v0, 0.0  ;;  %v268_v63 = vadd.f32 %v267_v19, %v1179_v4  ;;  %v306_v3 = vpack.c.bf16 %v298_v48, %v297_v53 }
  0xcb   :  { %v295_v23 = vmax.f32 %v271_v54, 0.0  ;;  %v293_v57 = vmax.f32 %v266_v37, 0.0  ;;  %v291_v4 = vmax.f32 %v261_v40, 0.0  ;;  %v292_v19 = vmax.f32 %v263_v1, 0.0 }
  0xcc   :  { %v300_v26 = vmax.f32 %v283_v59, 0.0  ;;  %v1257_v32 = vpop.permute.xlu1 %764  ;;  %v294_v14 = vmax.f32 %v268_v63, 0.0 }
  0xcd   :  { %v778_v33 = vrot.slane %v1257_v32, 2  ;;  %v1260_v35 = vpop.permute.xlu0 %659  ;;  %v305_v55 = vpack.c.bf16 %v296_v61, %v295_v23  ;;  %v303_v54 = vpack.c.bf16 %v292_v19, %v291_v4 }
  0xce   :  { %v667_v46 = vrot.slane %v1260_v35, 2  ;;  %v307_v43 = vpack.c.bf16 %v300_v26, %v299_v24  ;;  %v304_v53 = vpack.c.bf16 %v294_v14, %v293_v57  ;;  %v317_v24 = vsel %vm314_vm0, %v315_v42, %v316_v15 }
  0xd0   :  { %v1269_v60 = vsel %vm314_vm0, %v667_v46, %v778_v33  ;;  %329 = vmatpush.bf16.msrb.mxu1 %v307_v43  ;;  %v258_v43 = vadd.f32 %v1214_v22, %v1189_v9  ;;  %v79_v9 = vunpack.c.l.bf16 %v78_v7  ;;  %v953_v22 = vmov 12.0  }
  0xd1   :  { %941 = vrcp.f32 %v953_v22 }
  0xd2   :  { %v290_v51 = vmax.f32 %v258_v43, 0.0  ;;  %v342_v13 = vsel %vm341_vm3, %v79_v9, 0.0 }
  0xd3   :  { %v343_v36 = vrot.slane %v342_v13, 4 }
  0xd4   :  { %330 = vmatpush.bf16.msrb.mxu1 %v306_v3  ;;  %v302_v6 = vpack.c.bf16 %v290_v51, %v289_v2 }
  0xd5   :  { %v344_v20 = vadd.f32 %v343_v36, %v342_v13 }
  0xd7   :  { %v942_v59 = vpop.eup %941  ;;  %v345_v61 = vrot.slane %v344_v20, 2 }
  0xd8   :  { %331 = vmatpush.bf16.msrb.mxu1 %v305_v55  ;;  %v357_v0 = vmul.f32 12.0, %v942_v59  ;;  %vm361_vm4 = vweird.f32 %v942_v59 }
  0xd9   :  { %v346_v37 = vadd.f32 %v345_v61, %v344_v20 }
  0xda   :  { %v358_v3 = vsub.f32 1.0, %v357_v0 }
  0xdb   :  { %v347_v57 = vrot.slane %v346_v37, 1 }
  0xdc   :  { %332 = vmatpush.bf16.msrb.mxu1 %v304_v53  ;;  %v359_v14 = vmul.f32 %v942_v59, %v358_v3 }
  0xdd   :  { %v348_v4 = vadd.f32 %v347_v57, %v346_v37 }
  0xde   :  { %v360_v58 = vadd.f32 %v942_v59, %v359_v14 }
  0xe0   :  { %333 = vmatpush.bf16.msrb.mxu1 %v303_v54  ;;  %v362_v15 = vsel %vm361_vm4, %v942_v59, %v360_v58 }
  0xe4   :  { %334 = vmatpush.bf16.msrb.mxu1 %v302_v6 }
  0xe7   :  { %890 = vmatmul.msk.bf16.vlgmr.msrb.gmra.mxu1 %vm319_vm2, %v309_v5 }
 0x164   :  { %v336_v26 = vpop.f32.mrf.mxu1 }
 0x165   :  { %v337_v48 = vadd.f32 %v336_v26, %v317_v24 }
 0x167   :  { %v340_v63 = vmax.f32 %v337_v48, 0.0 }
 0x169   :  { %v349_v23 = vrot.slane %v340_v63, 4 }
 0x16b   :  { %v350_v40 = vadd.f32 %v349_v23, %v340_v63 }
 0x16c   :  { %v338_v1 = vpop.f32.mrf.mxu1 }
 0x16d   :  { %v351_v55 = vrot.slane %v350_v40, 2 }
 0x16f   :  { %v352_v62 = vadd.f32 %v351_v55, %v350_v40 }
 0x171   :  { %v353_v43 = vrot.slane %v352_v62, 1 }
 0x173   :  { %v354_v8 = vadd.f32 %v353_v43, %v352_v62 }
 0x175   :  { %v355_v19 = vadd.f32 %v354_v8, %v348_v4 }
 0x177   :  { %v363_v53 = vmul.f32 %v362_v15, %v355_v19 }
 0x179   :  { %v364_v2 = vsub.f32 %v79_v9, %v363_v53  ;;  %v365_v51 = vsub.f32 %v340_v63, %v363_v53 }
 0x17b   :  { %v366_v54 = vmul.f32 %v364_v2, %v364_v2  ;;  %v374_v6 = vmul.f32 %v365_v51, %v365_v51 }
 0x17d   :  { %v367_v5 = vsel %vm341_vm3, %v366_v54, 0.0  ;;  %v375_v7 = vrot.slane %v374_v6, 4 }
 0x17e   :  { %v368_v13 = vrot.slane %v367_v5, 4 }
 0x17f   :  { %v376_v22 = vadd.f32 %v375_v7, %v374_v6 }
 0x180   :  { %v369_v36 = vadd.f32 %v368_v13, %v367_v5  ;;  %v954_v5 = vmov 32.0  }
 0x181   :  { %v377_v42 = vrot.slane %v376_v22, 2 }
 0x182   :  { %v370_v20 = vrot.slane %v369_v36, 2 }
 0x183   :  { %v378_v24 = vadd.f32 %v377_v42, %v376_v22 }
 0x184   :  { %v371_v26 = vadd.f32 %v370_v20, %v369_v36  ;;  %v1389_v20 = vrot.slane %v1219_v28, 2 }
 0x185   :  { %v379_v0 = vrot.slane %v378_v24, 1 }
 0x186   :  { %v372_v48 = vrot.slane %v371_v26, 1 }
 0x187   :  { %v380_v61 = vadd.f32 %v379_v0, %v378_v24 }
 0x188   :  { %v373_v59 = vadd.f32 %v372_v48, %v371_v26 }
 0x18a   :  { %v381_v3 = vadd.f32 %v380_v61, %v373_v59 }
 0x18c   :  { %v382_v23 = vmul.f32 %v381_v3, %v362_v15  ;;  %v509_v15 = vrot.slane %v1200_v16, 2 }
 0x18e   :  { %v383_v9 = vadd.f32 1e-05, %v382_v23 }
 0x190   :  { %943 = vrsqrt.f32 %v383_v9  ;;  %vm390_vm6 = vweird.f32 %v383_v9 }
 0x191   :  { %945 = vrcp.f32 %v954_v5 }
 0x196   :  { %v944_v63 = vpop.eup %943 }
 0x197   :  { %v385_v37 = vmul.f32 %v944_v63, %v383_v9  ;;  %vm391_vm5 = vweird.f32 %v944_v63  ;;  %v946_v13 = vpop.eup %945 }
 0x198   :  { %vm392_vm7 = vmor %vm390_vm6, %vm391_vm5  ;;  %v537_v26 = vmul.f32 32.0, %v946_v13  ;;  %vm541_vm10 = vweird.f32 %v946_v13 }
 0x199   :  { %v386_v40 = vmul.f32 %v944_v63, %v385_v37 }
 0x19a   :  { %v538_v48 = vsub.f32 1.0, %v537_v26 }
 0x19b   :  { %v387_v1 = vmul.f32 0.5, %v386_v40 }
 0x19c   :  { %v539_v3 = vmul.f32 %v946_v13, %v538_v48 }
 0x19d   :  { %v388_v14 = vsub.f32 1.5, %v387_v1 }
 0x19f   :  { %v389_v55 = vmul.f32 %v944_v63, %v388_v14 }
 0x1a1   :  { %v393_v57 = vsel %vm392_vm7, %v944_v63, %v389_v55  ;;  %v540_v63 = vadd.f32 %v946_v13, %v539_v3 }
 0x1a2   :  { %v394_v62 = vmul.f32 %v393_v57, %v364_v2  ;;  %v395_v58 = vmul.f32 %v393_v57, %v365_v51 }
 0x1a3   :  { %v1310_v1 = vsel %vm541_vm10, %v946_v13, %v540_v63  ;;  %v595_v13 = vrot.slane %v1225_v39, 2  ;;  %v1390_v39 = vrot.slane %v1232_v45, 2 }
 0x1a4   :  { %436 = vmatpush.msra.mxu2 %v395_v58  ;;  %895 = vmatpush.msk.msrb.mxu3 %vm341_vm3, %v394_v62 }
 0x1a5   :  { %891 = vmatmul.msk.f32.vlgmr.msra.gmra.mxu2 %vm412_vm8, %v1191_v10  ;;  %896 = vmatmul.msk.f32.vlgmr.msrb.gmra.mxu3 %vm450_vm9, %v1062_v25 }
 0x1ad   :  { %892 = vmatmul.msk.f32.gmra.mxu2 %vm412_vm8, %v1195_v12  ;;  %897 = vmatmul.msk.f32.gmra.mxu3 %vm450_vm9, %v1079_v30  ;;  %v1388_v30 = vrot.slane %v1202_v17, 2 }
 0x1b5   :  { %893 = vmatmul.msk.f32.gmra.mxu2 %vm412_vm8, %v1193_v11  ;;  %898 = vmatmul.msk.f32.gmra.mxu3 %vm450_vm9, %v1074_v29  ;;  %v510_v11 = vsel %vm314_vm0, %v1388_v30, %v509_v15 }
 0x1bd   :  { %894 = vmatmul.msk.f32.gmra.mxu2 %vm412_vm8, %v1204_v18  ;;  %899 = vmatmul.msk.f32.gmra.mxu3 %vm450_vm9, %v1084_v31  ;;  %v511_v31 = vrot.slane %v1221_v34, 2 }
 0x1bf   :  { %v512_v16 = vsel %vm314_vm0, %v509_v15, %v511_v31  ;;  %v514_v24 = vsel %vm314_vm0, %v511_v31, %v1389_v20  ;;  %v627_v20 = vrot.slane %v1230_v44, 2  ;;  %v1391_v44 = vrot.slane %v1242_v49, 2  ;;  %v642_v49 = vld [vmem:[%s1381_s4 + $0x8] sm:$0xff] }
 0x228   :  { %v438_v43 = vpop.f32.mrf.mxu2  ;;  %v479_v4 = vpop.f32.mrf.mxu3 }
 0x229   :  { %v480_v8 = vadd.f32 %v479_v4, %v438_v43 }
 0x22b   :  { %v519_v25 = vadd.f32 %v1212_v21, %v480_v8 }
 0x22d   :  { %v523_v29 = vmax.f32 %v519_v25, 0.0 }
 0x230   :  { %v441_v10 = vpop.f32.mrf.mxu2  ;;  %v482_v19 = vpop.f32.mrf.mxu3 }
 0x231   :  { %v483_v12 = vadd.f32 %v482_v19, %v441_v10 }
 0x233   :  { %v520_v53 = vadd.f32 %v510_v11, %v483_v12 }
 0x235   :  { %v524_v2 = vmax.f32 %v520_v53, 0.0 }
 0x237   :  { %v527_v18 = vadd.f32 %v524_v2, %v523_v29 }
 0x238   :  { %v444_v51 = vpop.f32.mrf.mxu2  ;;  %v485_v54 = vpop.f32.mrf.mxu3 }
 0x239   :  { %v486_v6 = vadd.f32 %v485_v54, %v444_v51 }
 0x23b   :  { %v521_v7 = vadd.f32 %v512_v16, %v486_v6 }
 0x23d   :  { %v525_v21 = vmax.f32 %v521_v7, 0.0  ;;  %v599_v7 = vrot.slane %v1227_v41, 2 }
 0x23f   :  { %v528_v22 = vadd.f32 %v527_v18, %v525_v21 }
 0x240   :  { %v447_v17 = vpop.f32.mrf.mxu2  ;;  %v488_v36 = vpop.f32.mrf.mxu3 }
 0x241   :  { %v489_v42 = vadd.f32 %v488_v36, %v447_v17  ;;  %v612_v17 = vpop.permute.xlu2 %611 }
 0x242   :  { %v625_v36 = vrot.slane %v612_v17, 2 }
 0x243   :  { %v522_v34 = vadd.f32 %v514_v24, %v489_v42  ;;  %v629_v42 = vrot.slane %v1223_v38, 2 }
 0x245   :  { %v526_v0 = vmax.f32 %v522_v34, 0.0  ;;  %v630_v63 = vsel %vm314_vm0, %v627_v20, %v629_v42 }
 0x247   :  { %v529_v61 = vadd.f32 %v528_v22, %v526_v0 }
 0x249   :  { %v530_v59 = vrot.slane %v529_v61, 4 }
 0x24b   :  { %v531_v23 = vadd.f32 %v530_v59, %v529_v61  ;;  %v596_v61 = vsel %vm314_vm0, %v1390_v39, %v595_v13 }
 0x24d   :  { %v532_v9 = vrot.slane %v531_v23, 2 }
 0x24f   :  { %v533_v37 = vadd.f32 %v532_v9, %v531_v23  ;;  %v632_v9 = vsel %vm314_vm0, %v629_v42, %v1391_v44 }
 0x251   :  { %v534_v40 = vrot.slane %v533_v37, 1 }
 0x253   :  { %v535_v14 = vadd.f32 %v534_v40, %v533_v37  ;;  %v628_v37 = vsel %vm314_vm0, %v625_v36, %v627_v20  ;;  %v626_v40 = vsel %vm314_vm0, %v599_v7, %v625_v36 }
 0x255   :  { %v543_v28 = vmul.f32 %v1310_v1, %v535_v14 }
 0x257   :  { %v544_v55 = vsub.f32 %v523_v29, %v543_v28  ;;  %v545_v57 = vsub.f32 %v524_v2, %v543_v28  ;;  %v546_v62 = vsub.f32 %v525_v21, %v543_v28  ;;  %v547_v58 = vsub.f32 %v526_v0, %v543_v28 }
 0x258   :  { %v597_v21 = vrot.slane %v1217_v27, 2 }
 0x259   :  { %v548_v43 = vmul.f32 %v544_v55, %v544_v55  ;;  %v549_v4 = vmul.f32 %v545_v57, %v545_v57  ;;  %v550_v8 = vmul.f32 %v546_v62, %v546_v62  ;;  %v551_v10 = vmul.f32 %v547_v58, %v547_v58 }
 0x25a   :  { %v600_v41 = vsel %vm314_vm0, %v597_v21, %v599_v7  ;;  %v598_v27 = vsel %vm314_vm0, %v595_v13, %v597_v21 }
 0x25b   :  { %v552_v15 = vadd.f32 %v549_v4, %v548_v43  ;;  %v663_v43 = vrot.slane %v1244_v50, 2 }
 0x25d   :  { %v553_v19 = vadd.f32 %v552_v15, %v550_v8  ;;  %v1392_v8 = vrot.slane %v1246_v52, 2 }
 0x25f   :  { %v554_v25 = vadd.f32 %v553_v19, %v551_v10  ;;  %v664_v15 = vsel %vm314_vm0, %v1392_v8, %v663_v43 }
 0x261   :  { %v555_v12 = vrot.slane %v554_v25, 4 }
 0x263   :  { %v556_v30 = vadd.f32 %v555_v12, %v554_v25  ;;  %v656_v25 = vpop.permute.xlu2 %655 }
 0x265   :  { %v557_v11 = vrot.slane %v556_v30, 2 }
 0x267   :  { %v558_v53 = vadd.f32 %v557_v11, %v556_v30  ;;  %v665_v11 = vrot.slane %v656_v25, 2 }
 0x269   :  { %v559_v18 = vrot.slane %v558_v53, 1  ;;  %v668_v50 = vsel %vm314_vm0, %v665_v11, %v667_v46 }
 0x26b   :  { %v560_v31 = vadd.f32 %v559_v18, %v558_v53  ;;  %v666_v18 = vsel %vm314_vm0, %v663_v43, %v665_v11 }
 0x26d   :  { %v561_v51 = vmul.f32 %v560_v31, %v1310_v1 }
 0x26f   :  { %v562_v54 = vadd.f32 1e-05, %v561_v51 }
 0x271   :  { %947 = vrsqrt.f32 %v562_v54  ;;  %vm569_vm12 = vweird.f32 %v562_v54 }
 0x277   :  { %v948_v29 = vpop.eup %947 }
 0x278   :  { %v564_v2 = vmul.f32 %v948_v29, %v562_v54  ;;  %vm570_vm11 = vweird.f32 %v948_v29 }
 0x279   :  { %vm571_vm13 = vmor %vm569_vm12, %vm570_vm11 }
 0x27a   :  { %v565_v6 = vmul.f32 %v948_v29, %v564_v2 }
 0x27c   :  { %v566_v5 = vmul.f32 0.5, %v565_v6 }
 0x27e   :  { %v567_v16 = vsub.f32 1.5, %v566_v5 }
 0x280   :  { %v568_v22 = vmul.f32 %v948_v29, %v567_v16 }
 0x282   :  { %v572_v24 = vsel %vm571_vm13, %v948_v29, %v568_v22 }
 0x283   :  { %v576_v26 = vmul.f32 %v572_v24, %v547_v58  ;;  %v575_v34 = vmul.f32 %v572_v24, %v546_v62  ;;  %v574_v0 = vmul.f32 %v572_v24, %v545_v57  ;;  %v573_v48 = vmul.f32 %v572_v24, %v544_v55  ;;  %v643_v57 = vld [vmem:[%s1381_s4 + $0x10] sm:$0xff]  ;;  %v644_v62 = vld [vmem:[%s1381_s4 + $0x18] sm:$0xff] }
 0x285   :  { %v608_v59 = vmul.f32 %v600_v41, %v576_v26  ;;  %v607_v3 = vmul.f32 %v598_v27, %v575_v34  ;;  %v606_v23 = vmul.f32 %v596_v61, %v574_v0  ;;  %v605_v38 = vmul.f32 %v1240_v47, %v573_v48  ;;  %v641_v47 = vld [vmem:[%s1381_s4] sm:$0xff] }
 0x287   :  { %v640_v14 = vadd.f32 %v632_v9, %v608_v59  ;;  %v639_v28 = vadd.f32 %v630_v63, %v607_v3  ;;  %v638_v45 = vadd.f32 %v628_v37, %v606_v23  ;;  %v637_v55 = vadd.f32 %v626_v40, %v605_v38  ;;  %v769_v38 = vpop.permute.xlu2 %768  ;;  %v777_v63 = vpop.permute.xlu1 %776 }
 0x288   :  { %v773_v37 = vpop.permute.xlu0 %772 }
 0x289   :  { %698 = vmatpush.msrb.mxu2 %v640_v14 }
 0x28b   :  { %699 = vmatpush.msrb.mxu2 %v639_v28 }
 0x28d   :  { %700 = vmatpush.msrb.mxu2 %v638_v45 }
 0x28f   :  { %701 = vmatpush.msrb.mxu2 %v637_v55  ;;  %v797_v14 = vpop.permute.xlu2 %796 }
 0x290   :  { %900 = vmatmul.msk.f32.vlgmr.msrb.gmra.mxu2 %vm673_vm14, %v641_v47 }
 0x297   :  { %v809_v8 = vpop.permute.xlu2 %808 }
 0x298   :  { %901 = vmatmul.msk.f32.gmra.mxu2 %vm673_vm14, %v642_v49  ;;  %v805_v49 = vpop.permute.xlu1 %804 }
 0x2a0   :  { %902 = vmatmul.msk.f32.gmra.mxu2 %vm673_vm14, %v643_v57  ;;  %v801_v57 = vpop.permute.xlu0 %800 }
 0x2a8   :  { %903 = vmatmul.msk.f32.gmra.mxu2 %vm673_vm14, %v644_v62  ;;  %v784_v62 = vrot.slane %v777_v63, 2 }
 0x313   :  { %v703_v58 = vpop.f32.mrf.mxu2 }
 0x314   :  { %v704_v4 = vadd.f32 %v703_v58, %v1255_v56  ;;  %v782_v58 = vrot.slane %v773_v37, 2 }
 0x316   :  { %v715_v12 = vmax.f32 %v704_v4, 0.0  ;;  %v780_v4 = vrot.slane %v769_v38, 2 }
 0x31b   :  { %v706_v10 = vpop.f32.mrf.mxu2 }
 0x31c   :  { %v707_v19 = vadd.f32 %v706_v10, %v664_v15  ;;  %v814_v15 = vrot.slane %v805_v49, 2  ;;  %v812_v10 = vrot.slane %v801_v57, 2 }
 0x31e   :  { %v716_v30 = vmax.f32 %v707_v19, 0.0 }
 0x320   :  { %v719_v53 = vadd.f32 %v716_v30, %v715_v12 }
 0x323   :  { %v709_v31 = vpop.f32.mrf.mxu2 }
 0x324   :  { %v710_v51 = vadd.f32 %v709_v31, %v666_v18  ;;  %v781_v18 = vsel %vm314_vm0, %v778_v33, %v780_v4  ;;  %v783_v31 = vsel %vm314_vm0, %v780_v4, %v782_v58 }
 0x326   :  { %v717_v54 = vmax.f32 %v710_v51, 0.0  ;;  %v785_v51 = vsel %vm314_vm0, %v782_v58, %v784_v62 }
 0x328   :  { %v720_v29 = vadd.f32 %v719_v53, %v717_v54  ;;  %v816_v53 = vrot.slane %v809_v8, 2 }
 0x32b   :  { %v712_v52 = vpop.f32.mrf.mxu2 }
 0x32c   :  { %v713_v56 = vadd.f32 %v712_v52, %v668_v50 }
 0x32e   :  { %v718_v2 = vmax.f32 %v713_v56, 0.0 }
 0x330   :  { %v721_v6 = vadd.f32 %v720_v29, %v718_v2 }
 0x332   :  { %v722_v5 = vrot.slane %v721_v6, 4 }
 0x334   :  { %v723_v16 = vadd.f32 %v722_v5, %v721_v6  ;;  %v815_v5 = vsel %vm314_vm0, %v812_v10, %v814_v15 }
 0x336   :  { %v724_v7 = vrot.slane %v723_v16, 2 }
 0x338   :  { %v725_v21 = vadd.f32 %v724_v7, %v723_v16 }
 0x33a   :  { %v726_v13 = vrot.slane %v725_v21, 1 }
 0x33c   :  { %v727_v22 = vadd.f32 %v726_v13, %v725_v21 }
 0x33e   :  { %v728_v17 = vmul.f32 %v727_v22, %v1310_v1 }
 0x340   :  { %v729_v36 = vsub.f32 %v715_v12, %v728_v17  ;;  %v730_v42 = vsub.f32 %v716_v30, %v728_v17  ;;  %v731_v20 = vsub.f32 %v717_v54, %v728_v17  ;;  %v732_v24 = vsub.f32 %v718_v2, %v728_v17 }
 0x341   :  { %v817_v2 = vsel %vm314_vm0, %v814_v15, %v816_v53 }
 0x342   :  { %v733_v26 = vmul.f32 %v729_v36, %v729_v36  ;;  %v734_v35 = vmul.f32 %v730_v42, %v730_v42  ;;  %v735_v34 = vmul.f32 %v731_v20, %v731_v20  ;;  %v736_v0 = vmul.f32 %v732_v24, %v732_v24 }
 0x344   :  { %v737_v46 = vadd.f32 %v734_v35, %v733_v26 }
 0x346   :  { %v738_v48 = vadd.f32 %v737_v46, %v735_v34 }
 0x348   :  { %v739_v41 = vadd.f32 %v738_v48, %v736_v0 }
 0x34a   :  { %v740_v27 = vrot.slane %v739_v41, 4 }
 0x34c   :  { %v741_v39 = vadd.f32 %v740_v27, %v739_v41 }
 0x34e   :  { %v742_v61 = vrot.slane %v741_v39, 2 }
 0x350   :  { %v743_v59 = vadd.f32 %v742_v61, %v741_v39 }
 0x352   :  { %v744_v3 = vrot.slane %v743_v59, 1 }
 0x354   :  { %v745_v23 = vadd.f32 %v744_v3, %v743_v59 }
 0x356   :  { %v746_v44 = vmul.f32 %v745_v23, %v1310_v1  ;;  %v810_v1 = vrot.slane %v797_v14, 2 }
 0x358   :  { %v747_v9 = vadd.f32 1e-05, %v746_v44  ;;  %v811_v56 = vsel %vm314_vm0, %v784_v62, %v810_v1  ;;  %v813_v6 = vsel %vm314_vm0, %v810_v1, %v812_v10 }
 0x35a   :  { %949 = vrsqrt.f32 %v747_v9  ;;  %vm754_vm1 = vweird.f32 %v747_v9 }
 0x360   :  { %v950_v40 = vpop.eup %949 }
 0x361   :  { %v749_v28 = vmul.f32 %v950_v40, %v747_v9  ;;  %vm755_vm15 = vweird.f32 %v950_v40 }
 0x362   :  { %vm756_vm2 = vmor %vm754_vm1, %vm755_vm15 }
 0x363   :  { %v750_v45 = vmul.f32 %v950_v40, %v749_v28 }
 0x365   :  { %v751_v55 = vmul.f32 0.5, %v750_v45 }
 0x367   :  { %v752_v47 = vsub.f32 1.5, %v751_v55 }
 0x369   :  { %v753_v43 = vmul.f32 %v950_v40, %v752_v47 }
 0x36b   :  { %v757_v19 = vsel %vm756_vm2, %v950_v40, %v753_v43 }
 0x36c   :  { %v758_v25 = vmul.f32 %v757_v19, %v729_v36  ;;  %v759_v12 = vmul.f32 %v757_v19, %v730_v42  ;;  %v760_v30 = vmul.f32 %v757_v19, %v731_v20  ;;  %v761_v11 = vmul.f32 %v757_v19, %v732_v24 }
 0x36e   :  { %v790_v54 = vmul.f32 %v1269_v60, %v758_v25  ;;  %v791_v29 = vmul.f32 %v781_v18, %v759_v12  ;;  %v792_v50 = vmul.f32 %v783_v31, %v760_v30  ;;  %v793_v52 = vmul.f32 %v785_v51, %v761_v11 }
 0x370   :  { %v822_v32 = vadd.f32 %v811_v56, %v790_v54  ;;  %v823_v16 = vadd.f32 %v813_v6, %v791_v29  ;;  %v824_v33 = vadd.f32 %v815_v5, %v792_v50  ;;  %v825_v7 = vadd.f32 %v817_v2, %v793_v52 }
 0x372   :  { %826 = vst [vmem:[%s1382_s6] sm:$0xff] %v822_v32 }
 0x373   :  { %827 = vst [vmem:[%s1382_s6 + $0x8] sm:$0xff] %v823_v16 }
 0x374   :  { %828 = vst [vmem:[%s1382_s6 + $0x10] sm:$0xff] %v824_v33 }
 0x375   :  { %829 = vst [vmem:[%s1382_s6 + $0x18] sm:$0xff] %v825_v7 }

</bundles_post_ra>
